<compile_context>
chip_gen: v6e
topology: v6e:2x2x1
jax: 0.10.0
libtpu: 0.0.40
codegen_flags: <defaults>
</compile_context>

<pallas_src>
import functools

import jax
import jax.numpy as jnp
from jax.experimental import pallas as pl
from jax.experimental.pallas import tpu as pltpu

_LANES = 128
_TILE_ROWS = 2048   # 2048 * 128 * 4 B = 1 MiB per input tile


def _charbonnier_kernel(x_ref, y_ref, out_ref, *, eps, n_valid, tile_rows, inv_n):
    i = pl.program_id(0)

    @pl.when(i == 0)
    def _init():
        out_ref[0, 0] = jnp.float32(0.0)

    d = x_ref[...].astype(jnp.float32) - y_ref[...].astype(jnp.float32)
    err = jnp.sqrt(d * d + eps)

    # Mask out the zero-padded tail so arbitrary element counts stay exact.
    rows, lanes = err.shape
    row = jax.lax.broadcasted_iota(jnp.int32, (rows, lanes), 0)
    lane = jax.lax.broadcasted_iota(jnp.int32, (rows, lanes), 1)
    flat = (i * tile_rows + row) * lanes + lane
    err = jnp.where(flat < n_valid, err, 0.0)

    out_ref[0, 0] += jnp.sum(err)

    @pl.when(i == pl.num_programs(0) - 1)
    def _finalize():
        out_ref[0, 0] = out_ref[0, 0] * inv_n


def _round_up(a, b):
    return -(-a // b) * b


def charbonnier_loss(x, y, eps=1e-6):
    assert x.shape == y.shape, (x.shape, y.shape)
    n = int(x.size)

    rows = _round_up(pl.cdiv(n, _LANES), 8)           # sublane multiple
    tile_rows = min(_TILE_ROWS, rows)
    rows_padded = _round_up(rows, tile_rows)
    n_padded = rows_padded * _LANES

    def prep(t):
        t = jnp.ravel(t).astype(jnp.float32)
        t = jnp.pad(t, (0, n_padded - n))
        return t.reshape(rows_padded, _LANES)

    xf = prep(x)
    yf = prep(y)

    kern = functools.partial(_charbonnier_kernel, eps=float(eps), n_valid=n,
                             tile_rows=tile_rows, inv_n=1.0 / n)

    out = pl.pallas_call(
        kern,
        out_shape=jax.ShapeDtypeStruct((1, 1), jnp.float32),
        grid=(rows_padded // tile_rows,),
        in_specs=[pl.BlockSpec((tile_rows, _LANES), lambda i: (i, 0)),
                  pl.BlockSpec((tile_rows, _LANES), lambda i: (i, 0))],
        out_specs=pl.BlockSpec(memory_space=pltpu.MemorySpace.SMEM),
        compiler_params=pltpu.CompilerParams(
            dimension_semantics=("arbitrary",)),
    )(xf, yf)
    return out[0, 0]


if __name__ == "__main__":
    key = jax.random.PRNGKey(0)
    kx, ky = jax.random.split(key)
    x = jax.random.normal(kx, (2, 4, 16, 16), jnp.float32)
    y = jax.random.normal(ky, (2, 4, 16, 16), jnp.float32)

    loss = jax.jit(charbonnier_loss)(x, y)
    jax.block_until_ready(loss)

    # Pure-JAX reference for a sanity check.
    ref = jnp.mean(jnp.sqrt((x - y) ** 2 + 1e-6))
    assert loss.shape == () and jnp.isfinite(loss)
    assert jnp.allclose(loss, ref, rtol=1e-5, atol=1e-6), (loss, ref)
    print("KERNEL_OK")
</pallas_src>

<mosaic_0001>
module attributes {stable_mosaic.version = 11 : i64} {
  func.func @_charbonnier_kernel(%arg0: i32, %arg1: memref<16x128xf32, #tpu.memory_space<vmem>>, %arg2: memref<16x128xf32, #tpu.memory_space<vmem>>, %arg3: memref<1x1xf32, #tpu.memory_space<smem>>) attributes {dimension_semantics = [#tpu.dimension_semantics<arbitrary>], iteration_bounds = array<i64: 1>, scalar_prefetch = 0 : i64, scratch_operands = 0 : i64, tpu.core_type = #tpu.core_type<tc>, window_params = [{transform_indices = @transform_0, window_bounds = array<i64: 16, 128>}, {transform_indices = @transform_1, window_bounds = array<i64: 16, 128>}, {transform_indices = @transform_2, window_bounds = array<i64: 1, 1>}]} {
    %c0_i32 = arith.constant 0 : i32
    %0 = arith.cmpi eq, %arg0, %c0_i32 : i32
    %1 = arith.extui %0 : i1 to i32
    %c0_i32_0 = arith.constant 0 : i32
    %2 = arith.cmpi ne, %1, %c0_i32_0 : i32
    scf.if %2 {
      %cst_12 = arith.constant 0.000000e+00 : f32
      %c0_13 = arith.constant 0 : index
      %c0_14 = arith.constant 0 : index
      %32 = memref.load %arg3[%c0_13, %c0_14] : memref<1x1xf32, #tpu.memory_space<smem>>
      memref.store %cst_12, %arg3[%c0_13, %c0_14] : memref<1x1xf32, #tpu.memory_space<smem>>
    } else {
    }
    %c0 = arith.constant 0 : index
    %c0_1 = arith.constant 0 : index
    %3 = vector.load %arg1[%c0, %c0_1] : memref<16x128xf32, #tpu.memory_space<vmem>>, vector<16x128xf32>
    %c0_2 = arith.constant 0 : index
    %c0_3 = arith.constant 0 : index
    %4 = vector.load %arg2[%c0_2, %c0_3] : memref<16x128xf32, #tpu.memory_space<vmem>>, vector<16x128xf32>
    %5 = arith.subf %3, %4 : vector<16x128xf32>
    %6 = arith.mulf %5, %5 : vector<16x128xf32>
    %cst = arith.constant 9.99999997E-7 : f32
    %7 = vector.broadcast %cst : f32 to vector<16x128xf32>
    %8 = arith.addf %6, %7 : vector<16x128xf32>
    %9 = math.sqrt %8 : vector<16x128xf32>
    %10 = tpu.iota {dimensions = array<i32: 0>} : vector<16x128xi32>
    %11 = tpu.iota {dimensions = array<i32: 1>} : vector<16x128xi32>
    %c16_i32 = arith.constant 16 : i32
    %12 = arith.muli %arg0, %c16_i32 : i32
    %13 = vector.broadcast %12 : i32 to vector<16x128xi32>
    %14 = arith.addi %13, %10 : vector<16x128xi32>
    %c128_i32 = arith.constant 128 : i32
    %15 = vector.broadcast %c128_i32 : i32 to vector<16x128xi32>
    %16 = arith.muli %14, %15 : vector<16x128xi32>
    %17 = arith.addi %16, %11 : vector<16x128xi32>
    %c2048_i32 = arith.constant 2048 : i32
    %18 = vector.broadcast %c2048_i32 : i32 to vector<16x128xi32>
    %19 = arith.cmpi slt, %17, %18 : vector<16x128xi32>
    %cst_4 = arith.constant 0.000000e+00 : f32
    %20 = vector.broadcast %cst_4 : f32 to vector<16x128xf32>
    %21 = arith.select %19, %9, %20 : vector<16x128xi1>, vector<16x128xf32>
    %c0_5 = arith.constant 0 : index
    %c0_6 = arith.constant 0 : index
    %22 = memref.load %arg3[%c0_5, %c0_6] : memref<1x1xf32, #tpu.memory_space<smem>>
    %23 = vector.shape_cast %21 : vector<16x128xf32> to vector<1x16x128xf32>
    %cst_7 = arith.constant dense<0.000000e+00> : vector<1xf32>
    %24 = vector.multi_reduction <add>, %23, %cst_7 [1, 2] : vector<1x16x128xf32> to vector<1xf32>
    %25 = vector.shape_cast %24 : vector<1xf32> to vector<1x1x1xf32>
    %26 = vector.extract %25[0, 0, 0] : f32 from vector<1x1x1xf32>
    %27 = arith.addf %22, %26 : f32
    %c0_8 = arith.constant 0 : index
    %c0_9 = arith.constant 0 : index
    %28 = memref.load %arg3[%c0_8, %c0_9] : memref<1x1xf32, #tpu.memory_space<smem>>
    memref.store %27, %arg3[%c0_8, %c0_9] : memref<1x1xf32, #tpu.memory_space<smem>>
    %c0_i32_10 = arith.constant 0 : i32
    %29 = arith.cmpi eq, %arg0, %c0_i32_10 : i32
    %30 = arith.extui %29 : i1 to i32
    %c0_i32_11 = arith.constant 0 : i32
    %31 = arith.cmpi ne, %30, %c0_i32_11 : i32
    scf.if %31 {
      %c0_12 = arith.constant 0 : index
      %c0_13 = arith.constant 0 : index
      %32 = memref.load %arg3[%c0_12, %c0_13] : memref<1x1xf32, #tpu.memory_space<smem>>
      %cst_14 = arith.constant 4.8828125E-4 : f32
      %33 = arith.mulf %32, %cst_14 : f32
      %c0_15 = arith.constant 0 : index
      %c0_16 = arith.constant 0 : index
      %34 = memref.load %arg3[%c0_15, %c0_16] : memref<1x1xf32, #tpu.memory_space<smem>>
      memref.store %33, %arg3[%c0_15, %c0_16] : memref<1x1xf32, #tpu.memory_space<smem>>
    } else {
    }
    return
  }
  func.func @transform_0(%arg0: i32) -> (i32, i32) {
    %c0_i32 = arith.constant 0 : i32
    %c0_i32_0 = arith.constant 0 : i32
    return %arg0, %c0_i32 : i32, i32
  }
  func.func @transform_1(%arg0: i32) -> (i32, i32) {
    %c0_i32 = arith.constant 0 : i32
    %c0_i32_0 = arith.constant 0 : i32
    return %arg0, %c0_i32 : i32, i32
  }
  func.func @transform_2(%arg0: i32) -> (i32, i32) {
    %c0_i32 = arith.constant 0 : i32
    %c0_i32_0 = arith.constant 0 : i32
    %c0_i32_1 = arith.constant 0 : i32
    return %c0_i32, %c0_i32_0 : i32, i32
  }
}

</mosaic_0001>

<bundles_post_ra>
// kernel: charbonnier_loss.1
= control target key start
LH: loop header
LB: loop body
LE: loop exit
PB: predicated region body
PF: predicated region fallthrough
CT: control target
= control target key end

     0   :  { %s141_s0 = inlined_call_operand.vmem [shape: f32[16,128], index: 0, kind: input, shape index: {}]   ;;  %s142_s1 = inlined_call_operand.vmem [shape: f32[16,128], index: 1, kind: input, shape index: {}]   ;;  %s143_s2 = inlined_call_operand.hbm [shape: f32[1,1], index: 2, kind: output, shape index: {}]  }
   0x1   :  { %v18_v0 = vld [vmem:[%s141_s0] sm:$0xff]  ;;  %v19_v1 = vld [vmem:[%s141_s0 + $0x8] sm:$0xff] }
   0x2   :  { %v20_v2 = vld [vmem:[%s142_s1] sm:$0xff]  ;;  %v21_v3 = vld [vmem:[%s142_s1 + $0x8] sm:$0xff] }
   0x3   :  { %v22_v4 = vsub.f32 %v18_v0, %v20_v2 }
   0x4   :  { %7 = vsyncpa [#allocation3], 0  ;;  %v23_v5 = vsub.f32 %v19_v1, %v21_v3  ;;  %v42_v7 = vlaneseq  ;;  %s110_s17 = smov [#allocation2]  }
   0x5   :  { %v24_v6 = vmul.f32 %v22_v4, %v22_v4 }
   0x6   :  { %v25_v8 = vmul.f32 %v23_v5, %v23_v5  ;;  %v43_v11 = vshrl.u32 %v42_v7, 7  ;;  %v46_v13 = vand.u32 127, %v42_v7 }
   0x7   :  { %v26_v9 = vadd.f32 1e-06, %v24_v6 }
   0x8   :  { %v27_v10 = vadd.f32 1e-06, %v25_v8  ;;  %v44_v12 = vadd.s32 8, %v43_v11  ;;  %v51_v14 = vmul.u32 128, %v43_v11 }
   0x9   :  { %96 = vrsqrt.f32 %v26_v9  ;;  %vm30_vm0 = vcmp.eq.f32.partialorder %v26_v9, inf  ;;  %v33_v19 = vand.u32 2147483648, %v26_v9  ;;  %vm32_vm1 = vcmp.eq.f32.partialorder %v26_v9, 0.0 }
   0xa   :  { %98 = vrsqrt.f32 %v27_v10  ;;  %v52_v15 = vmul.u32 128, %v44_v12  ;;  %v53_v16 = vadd.s32 %v51_v14, %v46_v13  ;;  %vm37_vm2 = vcmp.eq.f32.partialorder %v27_v10, inf }
   0xb   :  { %v40_v22 = vand.u32 2147483648, %v27_v10  ;;  %vm39_vm3 = vcmp.eq.f32.partialorder %v27_v10, 0.0 }
   0xc   :  { %v54_v17 = vadd.s32 %v52_v15, %v46_v13  ;;  %vm55_vm4 = vcmp.lt.s32.totalorder %v53_v16, 2048 }
   0xe   :  { %vm56_vm5 = vcmp.lt.s32.totalorder %v54_v17, 2048 }
  0x16   :  { %v97_v18 = vpop.eup %96 }
  0x17   :  { %v99_v20 = vpop.eup %98  ;;  %v29_v21 = vmul.f32 %v97_v18, %v26_v9 }
  0x18   :  { %v36_v23 = vmul.f32 %v99_v20, %v27_v10 }
  0x19   :  { %v31_v24 = vsel %vm30_vm0, %v26_v9, %v29_v21 }
  0x1a   :  { %v34_v25 = vsel %vm32_vm1, %v33_v19, %v31_v24  ;;  %v38_v26 = vsel %vm37_vm2, %v27_v10, %v36_v23 }
  0x1b   :  { %v41_v27 = vsel %vm39_vm3, %v40_v22, %v38_v26  ;;  %v57_v28 = vsel %vm55_vm4, %v34_v25, 0.0 }
  0x1c   :  { %v58_v29 = vsel %vm56_vm5, %v41_v27, 0.0 }
  0x1d   :  { %v60_v30 = vadd.f32 %v58_v29, %v57_v28 }
  0x1f   :  { %61 = vadd.xlane.f32.xlu0 %v60_v30 }
  0xa8   :  { %v62_v31 = vpop.xlane.xlu0 %61 }
  0xa9   :  { %v63_v32 = vrot.slane %v62_v31, 4 }
  0xab   :  { %v64_v33 = vadd.f32 %v63_v32, %v62_v31 }
  0xad   :  { %v65_v34 = vrot.slane %v64_v33, 2 }
  0xaf   :  { %v66_v35 = vadd.f32 %v65_v34, %v64_v33 }
  0xb1   :  { %v67_v36 = vrot.slane %v66_v35, 1 }
  0xb3   :  { %v68_v37 = vadd.f32 %v67_v36, %v66_v35 }
  0xb5   :  { %92 = vpush %v68_v37 }
  0xe6   :  { %s93_s0 = spop %92 }
  0xe7   :  { %s77_s1 = smul.f32 0.00048828125, %s93_s0 }
  0xe9   :  { %78 = sst [smem:[#allocation2]] %s77_s1 }
  0xea   :  { %86 = dma.smem_to_hbm %s110_s17, 16, %s143_s2, [#allocation3]  }
  0xeb   :  { %108 = dma.done.wait [#allocation3], 16  }
  0xec   :  { %109 = vsyncadd [#allocation3], 4294967280 }
  0xed   :  { %90 = sfence }
  0xee   :  { %91 = vsyncpa [#allocation3], 1 }

</bundles_post_ra>
